<compile_context>
chip_gen: v7x
topology: tpu7x:2x2x1
jax: 0.10.0
libtpu: 0.0.40
codegen_flags: <defaults>
</compile_context>

<pallas_src>
import jax
import jax.numpy as jnp
from jax.experimental import pallas as pl
from jax.experimental.pallas import tpu as pltpu

LANES = 128
MAX_ROW_TILE = 8192          # 8192 x 128 x f32 = 4 MiB per input block


def _num_tensorcores():
    """Best-effort TensorCores-per-chip count (v7x: 2, v5e/v6e: 1)."""
    try:
        info = pltpu.get_tpu_info()
    except Exception:
        return 1
    for attr in ("num_cores", "num_tensorcores", "tensorcores_per_chip",
                 "cores_per_chip", "core_count"):
        v = getattr(info, attr, None)
        if v is None:
            continue
        try:
            v = int(v)
        except Exception:
            continue
        if v >= 1:
            return v
    return 1


def _build_mse_sum(rows, max_row_tile=MAX_ROW_TILE):
    """pallas_call producing per-shard (sub, 128) partial sums of (x - t)^2."""
    row_tile = rows if rows <= max_row_tile else max_row_tile
    sub = 8 if row_tile % 8 == 0 else row_tile      # accumulator sublane height
    total_blocks = pl.cdiv(rows, row_tile)
    cores = min(_num_tensorcores(), 2)
    num_shards = 2 if (cores >= 2 and total_blocks >= 2) else 1
    blocks_per_shard = pl.cdiv(total_blocks, num_shards)

    last_blk = total_blocks - 1
    has_partial = (rows % row_tile) != 0            # last block is row-ragged
    has_dup = num_shards * blocks_per_shard != total_blocks
    valid_rows_last = rows - last_blk * row_tile    # valid rows in last block

    def in_index_map(c, i):
        blk = c * blocks_per_shard + i
        if has_dup:
            # Tail blocks of the last shard just re-read the final valid
            # block; their contribution is skipped inside the kernel.
            blk = jnp.minimum(blk, last_blk)
        return (blk, 0)

    def kernel(x_ref, t_ref, out_ref):
        i = pl.program_id(1)
        blk = pl.program_id(0) * blocks_per_shard + i   # logical block id

        @pl.when(i == 0)
        def _init():
            out_ref[...] = jnp.zeros_like(out_ref)

        def accumulate(masked):
            d = x_ref[...].astype(jnp.float32) - t_ref[...].astype(jnp.float32)
            dd = d * d
            if masked:
                row_in_blk = jax.lax.broadcasted_iota(
                    jnp.int32, (row_tile, LANES), 0)
                dd = jnp.where(row_in_blk < valid_rows_last, dd, 0.0)
            # Sublane-group reduction: vreg-wise VALU adds only (no XLU),
            # then a single-vreg add into the resident output block.
            partial = dd.reshape(row_tile // sub, sub, LANES).sum(axis=0)
            out_ref[...] += partial[None, :, :]

        if has_partial:
            @pl.when(blk < last_blk)
            def _interior():
                accumulate(False)

            @pl.when(blk == last_blk)
            def _boundary():
                accumulate(True)
        elif has_dup:
            @pl.when(blk <= last_blk)
            def _valid():
                accumulate(False)
        else:
            accumulate(False)

    return pl.pallas_call(
        kernel,
        out_shape=jax.ShapeDtypeStruct((num_shards, sub, LANES), jnp.float32),
        grid_spec=pltpu.PrefetchScalarGridSpec(
            num_scalar_prefetch=0,
            grid=(num_shards, blocks_per_shard),
            in_specs=[
                pl.BlockSpec((row_tile, LANES), in_index_map),
                pl.BlockSpec((row_tile, LANES), in_index_map),
            ],
            out_specs=pl.BlockSpec((1, sub, LANES), lambda c, i: (c, 0, 0)),
        ),
        compiler_params=pltpu.CompilerParams(
            dimension_semantics=("parallel", "arbitrary"),
            vmem_limit_bytes=48 << 20,
        ),
    )


def _flatten_rows(x):
    """Flatten to (rows, 128) in the native dtype (free reshape when aligned).

    Only when numel % 128 != 0 is the final lane row zero-padded; x and target
    receive identical padding so the pad contributes 0 to the squared-diff sum.
    """
    flat = x.reshape(-1)
    n = flat.shape[0]
    rem = n % LANES
    if rem:
        # TODO(synk): this per-call pad materializes a copy of x; masking the
        # ragged lane tail inside the boundary block would avoid the copy.
        # It only triggers when numel % 128 != 0.
        flat = jnp.pad(flat, (0, LANES - rem))
    return flat.reshape(-1, LANES), n


def make_content_loss(target, max_row_tile=MAX_ROW_TILE):
    """Mirror of ContentLoss.__init__: preprocess the fixed target once."""
    t2d, n = _flatten_rows(target)
    rows = t2d.shape[0]
    mse_sum = _build_mse_sum(rows, max_row_tile)

    @jax.jit
    def _forward(x):
        x2d, _ = _flatten_rows(x)
        partials = mse_sum(x2d, t2d)                  # (shards, sub, 128) f32
        loss = jnp.sum(partials) / n                  # mean over true numel
        # PyTorch stashes `self.loss` as a module attribute side effect and
        # returns `input`; here the identity output and loss are both returned.
        return x, loss

    def forward(x):
        assert x.shape == target.shape, "input/target shape mismatch"
        return _forward(x)

    return forward


def content_loss_forward(x, target):
    """One-shot convenience wrapper (re-does target preprocessing per call)."""
    return make_content_loss(target)(x)


def _mse_ref(x, t):
    d = x.astype(jnp.float32) - t.astype(jnp.float32)
    return jnp.mean(d * d)


def _check(x, target, **kwargs):
    out, loss = make_content_loss(target, **kwargs)(x)
    out = jax.block_until_ready(out)
    loss = jax.block_until_ready(loss)
    ref = _mse_ref(x, target)
    assert out.shape == x.shape and out.dtype == x.dtype
    assert bool(jnp.all(out == x))
    assert bool(jnp.allclose(loss, ref, rtol=1e-5, atol=1e-6)), (loss, ref)
    return loss


if __name__ == "__main__":
    key = jax.random.PRNGKey(0)
    k0, k1, k2, k3, k4, k5 = jax.random.split(key, 6)

    # Primary case: small NCHW conv feature maps (batch=2, channels=4, 16x16).
    x = jax.random.normal(k0, (2, 4, 16, 16), dtype=jnp.float32)
    target = jax.random.normal(k1, (2, 4, 16, 16), dtype=jnp.float32)
    _check(x, target)

    # Lane-ragged numel (105 % 128 != 0): identical-zero-pad path, rows == 1.
    xr = jax.random.normal(k2, (3, 5, 7), dtype=jnp.float32)
    tr = jax.random.normal(k3, (3, 5, 7), dtype=jnp.float32)
    _check(xr, tr)

    # Multi-block + partial last block path (force a small row tile):
    # numel = 4443 -> 35 rows of 128 lanes -> 5 blocks of 8 rows, last block
    # has 3 valid rows and is masked in-kernel.
    xm = jax.random.normal(k4, (3, 1481), dtype=jnp.float32)
    tm = jax.random.normal(k5, (3, 1481), dtype=jnp.float32)
    _check(xm, tm, max_row_tile=8)

    print("KERNEL_OK")
</pallas_src>

<mosaic_0001>
module attributes {stable_mosaic.version = 11 : i64} {
  func.func @kernel(%arg0: i32, %arg1: i32, %arg2: memref<16x128xf32, #tpu.memory_space<vmem>>, %arg3: memref<16x128xf32, #tpu.memory_space<vmem>>, %arg4: memref<1x8x128xf32, #tpu.memory_space<vmem>>) attributes {dimension_semantics = [#tpu.dimension_semantics<parallel>, #tpu.dimension_semantics<arbitrary>], iteration_bounds = array<i64: 1, 1>, scalar_prefetch = 0 : i64, scratch_operands = 0 : i64, tpu.core_type = #tpu.core_type<tc>, window_params = [{transform_indices = @transform_0, window_bounds = array<i64: 16, 128>}, {transform_indices = @transform_1, window_bounds = array<i64: 16, 128>}, {transform_indices = @transform_2, window_bounds = array<i64: 1, 8, 128>}]} {
    %c0_i32 = arith.constant 0 : i32
    %0 = arith.cmpi eq, %arg1, %c0_i32 : i32
    %1 = arith.extui %0 : i1 to i32
    %c0_i32_0 = arith.constant 0 : i32
    %2 = arith.cmpi ne, %1, %c0_i32_0 : i32
    scf.if %2 {
      %cst_10 = arith.constant 0.000000e+00 : f32
      %13 = vector.broadcast %cst_10 : f32 to vector<1x8x128xf32>
      %c0_11 = arith.constant 0 : index
      %c0_12 = arith.constant 0 : index
      %c0_13 = arith.constant 0 : index
      %14 = vector.load %arg4[%c0_11, %c0_12, %c0_13] : memref<1x8x128xf32, #tpu.memory_space<vmem>>, vector<1x8x128xf32>
      tpu.vector_store %arg4[%c0_11, %c0_12, %c0_13], %13 {strides = array<i32>} : memref<1x8x128xf32, #tpu.memory_space<vmem>>, vector<1x8x128xf32>,
    } else {
    }
    %c0 = arith.constant 0 : index
    %c0_1 = arith.constant 0 : index
    %3 = vector.load %arg2[%c0, %c0_1] : memref<16x128xf32, #tpu.memory_space<vmem>>, vector<16x128xf32>
    %c0_2 = arith.constant 0 : index
    %c0_3 = arith.constant 0 : index
    %4 = vector.load %arg3[%c0_2, %c0_3] : memref<16x128xf32, #tpu.memory_space<vmem>>, vector<16x128xf32>
    %5 = arith.subf %3, %4 : vector<16x128xf32>
    %6 = arith.mulf %5, %5 : vector<16x128xf32>
    %7 = vector.shape_cast %6 : vector<16x128xf32> to vector<2x8x128xf32>
    %cst = arith.constant dense<0.000000e+00> : vector<8x128xf32>
    %8 = vector.multi_reduction <add>, %7, %cst [0] : vector<2x8x128xf32> to vector<8x128xf32>
    %c0_4 = arith.constant 0 : index
    %c0_5 = arith.constant 0 : index
    %c0_6 = arith.constant 0 : index
    %9 = vector.load %arg4[%c0_4, %c0_5, %c0_6] : memref<1x8x128xf32, #tpu.memory_space<vmem>>, vector<1x8x128xf32>
    %10 = vector.shape_cast %8 : vector<8x128xf32> to vector<1x8x128xf32>
    %11 = arith.addf %9, %10 : vector<1x8x128xf32>
    %c0_7 = arith.constant 0 : index
    %c0_8 = arith.constant 0 : index
    %c0_9 = arith.constant 0 : index
    %12 = vector.load %arg4[%c0_7, %c0_8, %c0_9] : memref<1x8x128xf32, #tpu.memory_space<vmem>>, vector<1x8x128xf32>
    tpu.vector_store %arg4[%c0_7, %c0_8, %c0_9], %11 {strides = array<i32>} : memref<1x8x128xf32, #tpu.memory_space<vmem>>, vector<1x8x128xf32>,
    return
  }
  func.func @transform_0(%arg0: i32, %arg1: i32) -> (i32, i32) {
    %c1_i32 = arith.constant 1 : i32
    %0 = arith.muli %arg0, %c1_i32 : i32
    %1 = arith.addi %0, %arg1 : i32
    %c0_i32 = arith.constant 0 : i32
    %c0_i32_0 = arith.constant 0 : i32
    return %1, %c0_i32 : i32, i32
  }
  func.func @transform_1(%arg0: i32, %arg1: i32) -> (i32, i32) {
    %c1_i32 = arith.constant 1 : i32
    %0 = arith.muli %arg0, %c1_i32 : i32
    %1 = arith.addi %0, %arg1 : i32
    %c0_i32 = arith.constant 0 : i32
    %c0_i32_0 = arith.constant 0 : i32
    return %1, %c0_i32 : i32, i32
  }
  func.func @transform_2(%arg0: i32, %arg1: i32) -> (i32, i32, i32) {
    %c0_i32 = arith.constant 0 : i32
    %c0_i32_0 = arith.constant 0 : i32
    %c0_i32_1 = arith.constant 0 : i32
    return %arg0, %c0_i32, %c0_i32_0 : i32, i32, i32
  }
}

</mosaic_0001>

<bundles_post_ra>
// kernel: _forward.1
= control target key start
LH: loop header
LB: loop body
LE: loop exit
PB: predicated region body
PF: predicated region fallthrough
CT: control target
= control target key end

     0   :  { %s119_s0 = inlined_call_operand.vmem [shape: f32[16,128], index: 0, kind: input, shape index: {}]   ;;  %s120_s1 = inlined_call_operand.vmem [shape: f32[16,128], index: 1, kind: input, shape index: {}]   ;;  %s121_s2 = inlined_call_operand.vmem [shape: f32[1,8,128], index: 2, kind: output, shape index: {}]  }
   0x1   :  { %v60_v0 = vld [vmem:[%s119_s0] sm:$0xff]  ;;  %v61_v1 = vld [vmem:[%s119_s0 + $0x8] sm:$0xff] }
   0x2   :  { %v62_v2 = vld [vmem:[%s120_s1] sm:$0xff]  ;;  %v63_v3 = vld [vmem:[%s120_s1 + $0x8] sm:$0xff] }
   0x3   :  { %v64_v4 = vsub.f32 %v60_v0, %v62_v2  ;;  %v65_v5 = vsub.f32 %v61_v1, %v63_v3 }
   0x5   :  { %v66_v6 = vmul.f32 %v64_v4, %v64_v4  ;;  %v67_v7 = vmul.f32 %v65_v5, %v65_v5 }
   0x7   :  { %v68_v8 = vadd.f32 %v67_v7, %v66_v6 }
   0x9   :  { %71 = vst [vmem:[%s121_s2] sm:$0xff] %v68_v8 }

</bundles_post_ra>
